<compile_context>
chip_gen: v7x
topology: tpu7x:2x2x1
jax: 0.10.0
libtpu: 0.0.40
codegen_flags: <defaults>
</compile_context>

<pallas_src>
import functools

import jax
import jax.numpy as jnp
from jax.experimental import pallas as pl
from jax.experimental.pallas import tpu as pltpu


# ----------------------------------------------------------------------------
# helpers
# ----------------------------------------------------------------------------
def _round_up(x, m):
    return ((x + m - 1) // m) * m


def _vmem_limit_bytes(needed):
    """Explicit scoped-VMEM limit sized from the chosen tiles (with headroom)."""
    try:
        phys = int(pltpu.get_tpu_info().vmem_capacity_bytes)
    except Exception:
        phys = 64 << 20          # conservative (v7x per-TC VMEM)
    return int(min(phys, max(32 << 20, int(needed * 1.3))))


def _pick_batch_tile(B, D, itemsize, tb_cap, block_budget):
    """Batch tile: >=2 blocks when B>=16 (v7x megacore), shrink if D is huge."""
    if B < 8:
        return B
    TB = min(tb_cap, max(8, _round_up(-(-B // 2), 8)))
    # resource safety: even the smallest (8-token) patch tile must fit budget
    while TB > 8 and TB * 8 * D * itemsize > block_budget:
        TB = max(8, _round_up(TB // 2, 8))
    return TB


def _pick_token_tile(N, TB, D, itemsize, block_budget):
    row_bytes = max(TB * D * itemsize, 1)
    tn_cap = max(8, (block_budget // row_bytes) // 8 * 8)
    return N if N <= tn_cap else tn_cap


# ----------------------------------------------------------------------------
# token-mean pooling: [B, N, D] -> [B, D] f32 (no host pad, tail masked)
# ----------------------------------------------------------------------------
def _mean_pool_kernel(x_ref, o_ref, *, inv_n, n_tokens, tn, mask_tail):
    n = pl.program_id(1)

    @pl.when(n == 0)
    def _():
        o_ref[...] = jnp.zeros_like(o_ref)

    x = x_ref[...].astype(jnp.float32)
    if mask_tail:
        tok = n * tn + jax.lax.broadcasted_iota(jnp.int32, x.shape, 1)
        x = jnp.where(tok < n_tokens, x, 0.0)
    o_ref[...] += jnp.sum(x, axis=1) * inv_n


def mean_pool(x, *, tb=256, block_budget=8 << 20):
    """Mean over the token axis (dim=1) of [B, N, D] -> [B, D] float32."""
    B, N, D = x.shape
    itemsize = x.dtype.itemsize
    TB = _pick_batch_tile(B, D, itemsize, tb, block_budget)
    TN = _pick_token_tile(N, TB, D, itemsize, block_budget)
    mask_tail = (N % TN) != 0
    grid = (pl.cdiv(B, TB), pl.cdiv(N, TN))
    vmem_need = 2 * (TB * TN * D * itemsize + TB * D * 4)

    return pl.pallas_call(
        functools.partial(_mean_pool_kernel, inv_n=1.0 / N, n_tokens=N,
                          tn=TN, mask_tail=mask_tail),
        out_shape=jax.ShapeDtypeStruct((B, D), jnp.float32),
        grid_spec=pltpu.PrefetchScalarGridSpec(
            num_scalar_prefetch=0,
            grid=grid,
            in_specs=[pl.BlockSpec((TB, TN, D), lambda b, n: (b, n, 0))],
            out_specs=pl.BlockSpec((TB, D), lambda b, n: (b, 0)),
        ),
        compiler_params=pltpu.CompilerParams(
            dimension_semantics=("parallel", "arbitrary"),
            vmem_limit_bytes=_vmem_limit_bytes(vmem_need)),
    )(x)


# ----------------------------------------------------------------------------
# fully fused forward: y = cls @ W_cls + mean(patch) @ W_pool + b
# grid = (B blocks, H blocks, N token-tiles); f32 accumulation in the output
# ----------------------------------------------------------------------------
def _fused_cls_pool_linear_kernel(cls_ref, patch_ref, wc_ref, wp_ref, b_ref,
                                  o_ref, *, inv_n, n_tokens, tn, mask_tail):
    n = pl.program_id(2)

    @pl.when(n == 0)
    def _():
        # class-token contribution + bias, exactly once per (B, H) block
        o_ref[...] = (jnp.dot(cls_ref[...].astype(jnp.float32), wc_ref[...],
                              preferred_element_type=jnp.float32)
                      + b_ref[...])

    x = patch_ref[...].astype(jnp.float32)
    if mask_tail:
        tok = n * tn + jax.lax.broadcasted_iota(jnp.int32, x.shape, 1)
        x = jnp.where(tok < n_tokens, x, 0.0)
    pooled = jnp.sum(x, axis=1) * inv_n                     # [TB, D]
    o_ref[...] += jnp.dot(pooled, wp_ref[...],
                          preferred_element_type=jnp.float32)


def fused_cls_pool_linear(cls, patch, w_cls, w_pool, b_pad, *,
                          tb=256, th=256, block_budget=8 << 20):
    """cls:[B,Fc], patch:[B,N,D], w_cls:[Fc,Hp], w_pool:[D,Hp], b:[1,Hp]."""
    B, Fc = cls.shape
    _, N, D = patch.shape
    H_pad = w_cls.shape[1]
    itemsize = patch.dtype.itemsize

    TB = _pick_batch_tile(B, D, itemsize, tb, block_budget)
    TN = _pick_token_tile(N, TB, D, itemsize, block_budget)
    TH = min(th, H_pad)
    if H_pad % TH != 0:
        TH = 128                                   # H_pad is a multiple of 128
    mask_tail = (N % TN) != 0
    grid = (pl.cdiv(B, TB), H_pad // TH, pl.cdiv(N, TN))

    vmem_need = 2 * (TB * TN * D * itemsize
                     + TB * Fc * cls.dtype.itemsize
                     + (Fc + D + 1) * TH * 4
                     + TB * TH * 4)

    return pl.pallas_call(
        functools.partial(_fused_cls_pool_linear_kernel,
                          inv_n=1.0 / N, n_tokens=N, tn=TN,
                          mask_tail=mask_tail),
        out_shape=jax.ShapeDtypeStruct((B, H_pad), jnp.float32),
        grid_spec=pltpu.PrefetchScalarGridSpec(
            num_scalar_prefetch=0,
            grid=grid,
            in_specs=[
                pl.BlockSpec((TB, Fc), lambda b, h, n: (b, 0)),
                pl.BlockSpec((TB, TN, D), lambda b, h, n: (b, n, 0)),
                pl.BlockSpec((Fc, TH), lambda b, h, n: (0, h)),
                pl.BlockSpec((D, TH), lambda b, h, n: (0, h)),
                pl.BlockSpec((1, TH), lambda b, h, n: (0, h)),
            ],
            out_specs=pl.BlockSpec((TB, TH), lambda b, h, n: (b, h)),
        ),
        compiler_params=pltpu.CompilerParams(
            dimension_semantics=("parallel", "parallel", "arbitrary"),
            vmem_limit_bytes=_vmem_limit_bytes(vmem_need)),
    )(cls, patch, w_cls, w_pool, b_pad)


# ----------------------------------------------------------------------------
# plain fused multi-head linear (use_avgpool=False path): y = x @ W + b
# ----------------------------------------------------------------------------
def _linear_kernel(x_ref, w_ref, b_ref, o_ref):
    o_ref[...] = (jnp.dot(x_ref[...].astype(jnp.float32), w_ref[...],
                          preferred_element_type=jnp.float32)
                  + b_ref[...])


def linear_padded(x, w_pad, b_pad, *, tb=256, th=256):
    B, F = x.shape
    H_pad = w_pad.shape[1]
    TB = B if B < 8 else min(tb, max(8, _round_up(-(-B // 2), 8)))
    TH = min(th, H_pad)
    if H_pad % TH != 0:
        TH = 128
    grid = (pl.cdiv(B, TB), H_pad // TH)
    vmem_need = 2 * (TB * F * x.dtype.itemsize + (F + 1) * TH * 4 + TB * TH * 4)

    return pl.pallas_call(
        _linear_kernel,
        out_shape=jax.ShapeDtypeStruct((B, H_pad), jnp.float32),
        grid_spec=pltpu.PrefetchScalarGridSpec(
            num_scalar_prefetch=0,
            grid=grid,
            in_specs=[
                pl.BlockSpec((TB, F), lambda b, h: (b, 0)),
                pl.BlockSpec((F, TH), lambda b, h: (0, h)),
                pl.BlockSpec((1, TH), lambda b, h: (0, h)),
            ],
            out_specs=pl.BlockSpec((TB, TH), lambda b, h: (b, h)),
        ),
        compiler_params=pltpu.CompilerParams(
            dimension_semantics=("parallel", "parallel"),
            vmem_limit_bytes=_vmem_limit_bytes(vmem_need)),
    )(x, w_pad, b_pad)


# ----------------------------------------------------------------------------
# Module-equivalent wrappers
# ----------------------------------------------------------------------------
def create_linear_input(x_tokens_list, multilayers, use_avgpool):
    intermediate_output = [x_tokens_list[idx] for idx in multilayers]
    output = jnp.concatenate(
        [class_token for _, class_token in intermediate_output], axis=-1)
    if use_avgpool:
        pooled = mean_pool(intermediate_output[-1][0])          # Pallas (tiled)
        output = jnp.concatenate((output.astype(jnp.float32), pooled), axis=-1)
        output = output.reshape(output.shape[0], -1)
    return output.astype(jnp.float32)


class LinearClassifier:
    """JAX/Pallas equivalent of the PyTorch LinearClassifier module."""

    def __init__(self, out_dim, multilayers, use_avgpool, heads, key):
        self.out_dim = out_dim
        self.multilayers = list(multilayers)
        self.use_avgpool = use_avgpool
        self.heads = tuple(heads)

        # nn.Linear(out_dim, h): weight ~ N(0, 0.01), bias zeros.  Stored
        # pre-transposed [out_dim, h] and fused across heads into one
        # [out_dim, sum(heads)] weight, pre-padded ONCE to a lane-dense H_pad.
        ws, bs = [], []
        for h in self.heads:
            key, sub = jax.random.split(key)
            ws.append(0.01 * jax.random.normal(sub, (out_dim, h),
                                               dtype=jnp.float32))
            bs.append(jnp.zeros((h,), dtype=jnp.float32))
        self.w_all = jnp.concatenate(ws, axis=1)            # [F, H]
        self.b_all = jnp.concatenate(bs, axis=0)            # [H]

        H = self.w_all.shape[1]
        H_pad = _round_up(H, 128)
        self.w_pad = jnp.pad(self.w_all, ((0, 0), (0, H_pad - H)))   # [F, Hp]
        self.b_pad = jnp.pad(self.b_all, (0, H_pad - H)).reshape(1, H_pad)

        offs = [0]
        for h in self.heads:
            offs.append(offs[-1] + h)
        self._head_offsets = offs

    def __call__(self, x_tokens_list):
        cls = jnp.concatenate(
            [x_tokens_list[i][1] for i in self.multilayers], axis=-1)
        if self.use_avgpool:
            patch = x_tokens_list[self.multilayers[-1]][0]
            D = patch.shape[-1]
            Fc = cls.shape[-1]
            assert Fc + D == self.out_dim, (Fc, D, self.out_dim)
            w_cls = self.w_pad[:Fc]                 # row-split of the fused W
            w_pool = self.w_pad[Fc:self.out_dim]
            y_all = fused_cls_pool_linear(cls, patch, w_cls, w_pool, self.b_pad)
        else:
            assert cls.shape[-1] == self.out_dim
            y_all = linear_padded(cls, self.w_pad, self.b_pad)
        return [
            y_all[:, lo:hi]
            for lo, hi in zip(self._head_offsets[:-1], self._head_offsets[1:])
        ]


# ----------------------------------------------------------------------------
# Demo / smoke test
# ----------------------------------------------------------------------------
if __name__ == "__main__":
    key = jax.random.PRNGKey(0)

    B, N, D = 2, 8, 32          # batch, tokens, embed dim
    n_layers = 3
    multilayers = [0, 2]
    heads = (10, 5)

    # Build x_tokens_list: one (patch_tokens, class_token) pair per layer.
    x_tokens_list = []
    for _ in range(n_layers):
        key, k1, k2 = jax.random.split(key, 3)
        patch_tokens = jax.random.normal(k1, (B, N, D), dtype=jnp.float32)
        class_token = jax.random.normal(k2, (B, D), dtype=jnp.float32)
        x_tokens_list.append((patch_tokens, class_token))

    # --- use_avgpool=True path: single fused kernel -------------------------
    out_dim = D * len(multilayers) + D          # = 96
    key, pkey = jax.random.split(key)
    model = LinearClassifier(out_dim, multilayers, True, heads, pkey)
    outputs = [jax.block_until_ready(o) for o in model(x_tokens_list)]

    feat_ref = jnp.concatenate(
        [x_tokens_list[i][1] for i in multilayers]
        + [jnp.mean(x_tokens_list[multilayers[-1]][0], axis=1)],
        axis=-1,
    ).astype(jnp.float32)
    y_ref_all = feat_ref @ model.w_all + model.b_all
    off = 0
    for o, h in zip(outputs, heads):
        ref = y_ref_all[:, off:off + h]
        off += h
        assert o.shape == (B, h), o.shape
        assert jnp.allclose(o, ref, atol=1e-5, rtol=1e-5)

    # create_linear_input (standalone Pallas mean-pool) matches the reference
    feat = jax.block_until_ready(
        create_linear_input(x_tokens_list, multilayers, True))
    assert jnp.allclose(feat, feat_ref, atol=1e-5, rtol=1e-5)

    # --- use_avgpool=False path: single lane-dense linear kernel ------------
    key, pkey2 = jax.random.split(key)
    model2 = LinearClassifier(D * len(multilayers), multilayers, False, (7,),
                              pkey2)
    out2 = [jax.block_until_ready(o) for o in model2(x_tokens_list)]
    feat2_ref = jnp.concatenate(
        [x_tokens_list[i][1] for i in multilayers], axis=-1).astype(jnp.float32)
    y2_ref = feat2_ref @ model2.w_all + model2.b_all
    assert out2[0].shape == (B, 7)
    assert jnp.allclose(out2[0], y2_ref, atol=1e-5, rtol=1e-5)

    print("KERNEL_OK")
</pallas_src>

<mosaic_0001>
module attributes {stable_mosaic.version = 11 : i64} {
  func.func @_fused_cls_pool_linear_kernel(%arg0: i32, %arg1: i32, %arg2: i32, %arg3: memref<2x64xf32, #tpu.memory_space<vmem>>, %arg4: memref<2x8x32xf32, #tpu.memory_space<vmem>>, %arg5: memref<64x128xf32, #tpu.memory_space<vmem>>, %arg6: memref<32x128xf32, #tpu.memory_space<vmem>>, %arg7: memref<1x128xf32, #tpu.memory_space<vmem>>, %arg8: memref<2x128xf32, #tpu.memory_space<vmem>>) attributes {dimension_semantics = [#tpu.dimension_semantics<parallel>, #tpu.dimension_semantics<parallel>, #tpu.dimension_semantics<arbitrary>], iteration_bounds = array<i64: 1, 1, 1>, scalar_prefetch = 0 : i64, scratch_operands = 0 : i64, tpu.core_type = #tpu.core_type<tc>, window_params = [{transform_indices = @transform_0, window_bounds = array<i64: 2, 64>}, {transform_indices = @transform_1, window_bounds = array<i64: 2, 8, 32>}, {transform_indices = @transform_2, window_bounds = array<i64: 64, 128>}, {transform_indices = @transform_3, window_bounds = array<i64: 32, 128>}, {transform_indices = @transform_4, window_bounds = array<i64: 1, 128>}, {transform_indices = @transform_5, window_bounds = array<i64: 2, 128>}]} {
    %c0_i32 = arith.constant 0 : i32
    %0 = arith.cmpi eq, %arg2, %c0_i32 : i32
    %1 = arith.extui %0 : i1 to i32
    %c0_i32_0 = arith.constant 0 : i32
    %2 = arith.cmpi ne, %1, %c0_i32_0 : i32
    scf.if %2 {
      %c0_11 = arith.constant 0 : index
      %c0_12 = arith.constant 0 : index
      %12 = vector.load %arg3[%c0_11, %c0_12] : memref<2x64xf32, #tpu.memory_space<vmem>>, vector<2x64xf32>
      %c0_13 = arith.constant 0 : index
      %c0_14 = arith.constant 0 : index
      %13 = vector.load %arg5[%c0_13, %c0_14] : memref<64x128xf32, #tpu.memory_space<vmem>>, vector<64x128xf32>
      %cst_15 = arith.constant dense<0.000000e+00> : vector<2x128xf32>
      %14 = tpu.matmul %12, %13, %cst_15 {dimension_numbers = #tpu.dot_dimension_numbers<[1], [0], [0], [1], [0, 0, 1, 1], [], []>} : vector<2x64xf32>, vector<64x128xf32>, vector<2x128xf32> -> vector<2x128xf32>
      %c0_16 = arith.constant 0 : index
      %c0_17 = arith.constant 0 : index
      %15 = vector.load %arg7[%c0_16, %c0_17] : memref<1x128xf32, #tpu.memory_space<vmem>>, vector<1x128xf32>
      %16 = vector.broadcast %15 : vector<1x128xf32> to vector<2x128xf32>
      %17 = arith.addf %14, %16 : vector<2x128xf32>
      %c0_18 = arith.constant 0 : index
      %c0_19 = arith.constant 0 : index
      %18 = vector.load %arg8[%c0_18, %c0_19] : memref<2x128xf32, #tpu.memory_space<vmem>>, vector<2x128xf32>
      tpu.vector_store %arg8[%c0_18, %c0_19], %17 {strides = array<i32>} : memref<2x128xf32, #tpu.memory_space<vmem>>, vector<2x128xf32>,
    } else {
    }
    %c0 = arith.constant 0 : index
    %c0_1 = arith.constant 0 : index
    %c0_2 = arith.constant 0 : index
    %3 = vector.load %arg4[%c0, %c0_1, %c0_2] : memref<2x8x32xf32, #tpu.memory_space<vmem>>, vector<2x8x32xf32>
    %cst = arith.constant dense<0.000000e+00> : vector<2x32xf32>
    %4 = vector.multi_reduction <add>, %3, %cst [1] : vector<2x8x32xf32> to vector<2x32xf32>
    %cst_3 = arith.constant 1.250000e-01 : f32
    %5 = vector.broadcast %cst_3 : f32 to vector<2x32xf32>
    %6 = arith.mulf %4, %5 : vector<2x32xf32>
    %c0_4 = arith.constant 0 : index
    %c0_5 = arith.constant 0 : index
    %7 = vector.load %arg8[%c0_4, %c0_5] : memref<2x128xf32, #tpu.memory_space<vmem>>, vector<2x128xf32>
    %c0_6 = arith.constant 0 : index
    %c0_7 = arith.constant 0 : index
    %8 = vector.load %arg6[%c0_6, %c0_7] : memref<32x128xf32, #tpu.memory_space<vmem>>, vector<32x128xf32>
    %cst_8 = arith.constant dense<0.000000e+00> : vector<2x128xf32>
    %9 = tpu.matmul %6, %8, %cst_8 {dimension_numbers = #tpu.dot_dimension_numbers<[1], [0], [0], [1], [0, 0, 1, 1], [], []>} : vector<2x32xf32>, vector<32x128xf32>, vector<2x128xf32> -> vector<2x128xf32>
    %10 = arith.addf %7, %9 : vector<2x128xf32>
    %c0_9 = arith.constant 0 : index
    %c0_10 = arith.constant 0 : index
    %11 = vector.load %arg8[%c0_9, %c0_10] : memref<2x128xf32, #tpu.memory_space<vmem>>, vector<2x128xf32>
    tpu.vector_store %arg8[%c0_9, %c0_10], %10 {strides = array<i32>} : memref<2x128xf32, #tpu.memory_space<vmem>>, vector<2x128xf32>,
    return
  }
  func.func @transform_0(%arg0: i32, %arg1: i32, %arg2: i32) -> (i32, i32) {
    %c0_i32 = arith.constant 0 : i32
    %c0_i32_0 = arith.constant 0 : i32
    return %arg0, %c0_i32 : i32, i32
  }
  func.func @transform_1(%arg0: i32, %arg1: i32, %arg2: i32) -> (i32, i32, i32) {
    %c0_i32 = arith.constant 0 : i32
    %c0_i32_0 = arith.constant 0 : i32
    return %arg0, %arg2, %c0_i32 : i32, i32, i32
  }
  func.func @transform_2(%arg0: i32, %arg1: i32, %arg2: i32) -> (i32, i32) {
    %c0_i32 = arith.constant 0 : i32
    %c0_i32_0 = arith.constant 0 : i32
    return %c0_i32, %arg1 : i32, i32
  }
  func.func @transform_3(%arg0: i32, %arg1: i32, %arg2: i32) -> (i32, i32) {
    %c0_i32 = arith.constant 0 : i32
    %c0_i32_0 = arith.constant 0 : i32
    return %c0_i32, %arg1 : i32, i32
  }
  func.func @transform_4(%arg0: i32, %arg1: i32, %arg2: i32) -> (i32, i32) {
    %c0_i32 = arith.constant 0 : i32
    %c0_i32_0 = arith.constant 0 : i32
    return %c0_i32, %arg1 : i32, i32
  }
  func.func @transform_5(%arg0: i32, %arg1: i32, %arg2: i32) -> (i32, i32) {
    %c0_i32 = arith.constant 0 : i32
    return %arg0, %arg1 : i32, i32
  }
}

</mosaic_0001>

<bundles_post_ra>
// kernel: tpu_custom_call.1
= control target key start
LH: loop header
LB: loop body
LE: loop exit
PB: predicated region body
PF: predicated region fallthrough
CT: control target
= control target key end

     0   :  { %10 = vsyncpa [#allocation3], 0  ;;  %s596_s0 = inlined_call_operand.hbm [shape: f32[2,64], index: 0, kind: input, shape index: {}]   ;;  %s597_s1 = inlined_call_operand.hbm [shape: f32[2,8,32], index: 1, kind: input, shape index: {}]   ;;  %s598_s2 = inlined_call_operand.hbm [shape: f32[64,128], index: 2, kind: input, shape index: {}]   ;;  %s599_s3 = inlined_call_operand.hbm [shape: f32[32,128], index: 3, kind: input, shape index: {}]   ;;  %s600_s4 = inlined_call_operand.vmem [shape: f32[1,128], index: 4, kind: input, shape index: {}]   ;;  %s601_s5 = inlined_call_operand.hbm [shape: f32[2,128], index: 5, kind: output, shape index: {}]  }
   0x1   :  { %11 = vsyncpa [#allocation6], 0 }
   0x2   :  { %12 = vsyncpa [#allocation9], 0 }
   0x3   :  { %13 = vsyncpa [#allocation4], 0  ;;  %s481_s18 = smov [#allocation5]   ;;  %s363_s22 = scalar_lea.hbm %s597_s1, 256 }
   0x4   :  { %s29_s19 = sshll.u32 %s481_s18, 4  ;;  %p364_p0 = scmp.ne.s32.totalorder %s597_s1, %s363_s22  ;;  %s30_s19 = int_to_ptr.vmem [resolvable:$true] %s29_s19 }
   0x5   :  { %p367_p1 = scmp.lt.u32.totalorder %s363_s22, %s597_s1 }
   0x7   :  { %p369_p2 = pnand %p367_p1, %p364_p0 }
   0x9   :  { %372 = shalt.err (!%p369_p2)
}
   0xa   :  { %s373_s27 = scalar_lea.vmem %s30_s19, 256  ;;  %p378_p4 = scmp.lt.s32.totalorder %s30_s19, %s30_s19 }
   0xb   :  { %p374_p3 = scmp.ne.s32.totalorder %s30_s19, %s373_s27  ;;  %p379_p5 = scmp.lt.s32.totalorder %s373_s27, %s373_s27 }
   0xd   :  { %p380_p6 = por %p379_p5, %p378_p4 }
   0xf   :  { %p381_p7 = pnand %p380_p6, %p374_p3 }
  0x11   :  { %384 = shalt.err (!%p381_p7)
}
  0x12   :  { %s482_s28 = smov 128   ;;  %s483_s29 = smov 8  }
  0x13   :  { %35 = dma.hbm_to_vmem [thread:$0]  %s597_s1, 256, %s30_s19, [#allocation6], %s482_s28, %s482_s28, %s483_s29  }
  0x14   :  { %s484_s7 = smov [#allocation2]   ;;  %s485_s9 = smov [#allocation7]  }
  0x15   :  { %s20_s8 = sshll.u32 %s484_s7, 4  ;;  %s41_s10 = sshll.u32 %s485_s9, 4  ;;  %s21_s8 = int_to_ptr.vmem [resolvable:$true] %s20_s8  ;;  %s42_s10 = int_to_ptr.vmem [resolvable:$true] %s41_s10 }
  0x16   :  { %s385_s13 = scalar_lea.hbm %s596_s0, 32 }
  0x17   :  { %p386_p8 = scmp.ne.s32.totalorder %s596_s0, %s385_s13  ;;  %p389_p9 = scmp.lt.u32.totalorder %s385_s13, %s596_s0 }
  0x19   :  { %p391_p10 = pnand %p389_p9, %p386_p8 }
  0x1b   :  { %394 = shalt.err (!%p391_p10)
}
  0x1c   :  { %s395_s1 = scalar_lea.vmem %s21_s8, 32  ;;  %p400_p12 = scmp.lt.s32.totalorder %s21_s8, %s21_s8 }
  0x1d   :  { %p396_p11 = scmp.ne.s32.totalorder %s21_s8, %s395_s1  ;;  %p401_p13 = scmp.lt.s32.totalorder %s395_s1, %s395_s1 }
  0x1f   :  { %p402_p0 = por %p401_p13, %p400_p12 }
  0x21   :  { %p403_p1 = pnand %p402_p0, %p396_p11 }
  0x23   :  { %406 = shalt.err (!%p403_p1)
}
  0x24   :  { %23 = dma.hbm_to_vmem [thread:$0]  %s596_s0, 32, %s21_s8, [#allocation3]  }
  0x25   :  { %s407_s22 = scalar_lea.hbm %s598_s2, 1024 }
  0x26   :  { %p408_p2 = scmp.ne.s32.totalorder %s598_s2, %s407_s22  ;;  %p411_p3 = scmp.lt.u32.totalorder %s407_s22, %s598_s2 }
  0x28   :  { %p413_p4 = pnand %p411_p3, %p408_p2 }
  0x2a   :  { %416 = shalt.err (!%p413_p4)
}
  0x2b   :  { %s417_s27 = scalar_lea.vmem %s42_s10, 1024  ;;  %p422_p6 = scmp.lt.s32.totalorder %s42_s10, %s42_s10 }
  0x2c   :  { %p418_p5 = scmp.ne.s32.totalorder %s42_s10, %s417_s27  ;;  %p423_p7 = scmp.lt.s32.totalorder %s417_s27, %s417_s27 }
  0x2e   :  { %p424_p8 = por %p423_p7, %p422_p6 }
  0x30   :  { %p425_p9 = pnand %p424_p8, %p418_p5 }
  0x32   :  { %428 = shalt.err (!%p425_p9)
}
  0x33   :  { %47 = dma.hbm_to_vmem [thread:$0]  %s598_s2, 1024, %s42_s10, [#allocation6], %s482_s28, %s482_s28, %s483_s29  }
  0x34   :  { %s486_s6 = smov [#allocation8]   ;;  %s429_s11 = scalar_lea.hbm %s599_s3, 512 }
  0x35   :  { %s53_s7 = sshll.u32 %s486_s6, 4  ;;  %p430_p10 = scmp.ne.s32.totalorder %s599_s3, %s429_s11  ;;  %s54_s7 = int_to_ptr.vmem [resolvable:$true] %s53_s7 }
  0x36   :  { %p433_p11 = scmp.lt.u32.totalorder %s429_s11, %s599_s3 }
  0x38   :  { %p435_p12 = pnand %p433_p11, %p430_p10 }
  0x3a   :  { %438 = shalt.err (!%p435_p12)
}
  0x3b   :  { %s439_s16 = scalar_lea.vmem %s54_s7, 512  ;;  %p444_p0 = scmp.lt.s32.totalorder %s54_s7, %s54_s7 }
  0x3c   :  { %p440_p13 = scmp.ne.s32.totalorder %s54_s7, %s439_s16  ;;  %p445_p1 = scmp.lt.s32.totalorder %s439_s16, %s439_s16 }
  0x3e   :  { %p446_p2 = por %p445_p1, %p444_p0 }
  0x40   :  { %p447_p3 = pnand %p446_p2, %p440_p13 }
  0x42   :  { %450 = shalt.err (!%p447_p3)
}
  0x43   :  { %59 = dma.hbm_to_vmem [thread:$0]  %s599_s3, 512, %s54_s7, [#allocation9], %s482_s28, %s482_s28, %s483_s29  }
  0x44   :  { %473 = dma.done.wait [#allocation3], 32  }
  0x45   :  { %474 = vsyncadd [#allocation3], 4294967264 }
  0x46   :  { %475 = dma.done.wait [#allocation6], 1280  }
  0x47   :  { %476 = vsyncadd [#allocation6], 4294966016 }
  0x48   :  { %477 = dma.done.wait [#allocation9], 512  }
  0x49   :  { %478 = vsyncadd [#allocation9], 4294966784  ;;  %v487_v0 = vmov 0.0|0.0   ;;  %vm488_vm0 = vmmov 0   ;;  %v489_v1 = vmov 0.0   ;;  %v79_v2 = vld [vmem:[#allocation7] sm:$0xff] }
  0x4a   :  { %335 = vmatprep.subr.bf16.mxu0 %v487_v0  ;;  %321 = vmatprep.mubr.msk.f32.mxu0 %vm488_vm0, %v489_v1  ;;  %v80_v3 = vld [vmem:[#allocation7 + $0x8] sm:$0xff]  ;;  %v81_v4 = vld [vmem:[#allocation7 + $0x10] sm:$0xff]  ;;  %v82_v6 = vld [vmem:[#allocation7 + $0x18] sm:$0xff]  ;;  %vm171_vm1 = vcmask 261120   ;;  %vm94_vm2 = vcmask 523264   ;;  %vm195_vm3 = vcmask 1041409  }
  0x4b   :  { %347 = vmatprep.subr.bf16.mxu1 %v487_v0  ;;  %332 = vmatprep.mubr.msk.f32.mxu1 %vm488_vm0, %v489_v1  ;;  %v336_v5 = vpack.c.bf16 %v80_v3, %v79_v2  ;;  %v83_v7 = vld [vmem:[#allocation7 + $0x20] sm:$0xff]  ;;  %v84_v8 = vld [vmem:[#allocation7 + $0x28] sm:$0xff]  ;;  %v339_v9 = vpack.c.bf16 %v82_v6, %v81_v4  ;;  %v191_v12 = vld [vmem:[#allocation8 + $0x10] sm:$0xff]  ;;  %s490_s29 = smov [#allocation10]  }
  0x4c   :  { %v189_v10 = vld [vmem:[#allocation8] sm:$0xff]  ;;  %v190_v11 = vld [vmem:[#allocation8 + $0x8] sm:$0xff]  ;;  %v192_v14 = vld [vmem:[#allocation8 + $0x18] sm:$0xff]  ;;  %v342_v22 = vpack.c.bf16 %v84_v8, %v83_v7  ;;  %s277_s17 = sshll.u32 %s490_s29, 4  ;;  %s278_s17 = int_to_ptr.vmem [resolvable:$true] %s277_s17 }
  0x4d   :  { %337 = vmatpush3.bf16.msra.mxu0 %v336_v5  ;;  %v348_v13 = vpack.c.bf16 %v190_v11, %v189_v10  ;;  %v169_v15 = vld [vmem:[#allocation5] sm:$0xff]  ;;  %v170_v16 = vld [vmem:[#allocation5 + $0x8] sm:$0xff]  ;;  %v351_v19 = vpack.c.bf16 %v192_v14, %v191_v12  ;;  %v78_v34 = vld [vmem:[#allocation2] sm:$0x3]  ;;  %s451_s1 = scalar_lea.vmem %s278_s17, 32  ;;  %p456_p5 = scmp.lt.s32.totalorder %s278_s17, %s278_s17 }
  0x4e   :  { %338 = vmatprep.subr.bf16.mxu0 %v487_v0  ;;  %v172_v17 = vsel %vm171_vm1, %v169_v15, 0.0  ;;  %v179_v18 = vsel %vm171_vm1, %v170_v16, 0.0  ;;  %v85_v23 = vld [vmem:[#allocation7 + $0x30] sm:$0xff]  ;;  %v86_v24 = vld [vmem:[#allocation7 + $0x38] sm:$0xff]  ;;  %v288_v40 = vld [vmem:[%s600_s4] ss:$0 sm:$0xff]  ;;  %p452_p4 = scmp.ne.s32.totalorder %s278_s17, %s451_s1  ;;  %p457_p6 = scmp.lt.s32.totalorder %s451_s1, %s451_s1 }
  0x4f   :  { %349 = vmatpush3.bf16.msra.mxu1 %v348_v13  ;;  %v173_v20 = vrot.slane %v172_v17, 4  ;;  %v180_v21 = vrot.slane %v179_v18, 4  ;;  %v345_v29 = vpack.c.bf16 %v86_v24, %v85_v23 }
  0x50   :  { %350 = vmatprep.subr.bf16.mxu1 %v487_v0  ;;  %p458_p7 = por %p457_p6, %p456_p5 }
  0x51   :  { %340 = vmatpush3.bf16.msra.mxu0 %v339_v9  ;;  %v174_v25 = vadd.f32 %v173_v20, %v172_v17  ;;  %v181_v26 = vadd.f32 %v180_v21, %v179_v18 }
  0x52   :  { %341 = vmatprep.subr.bf16.mxu0 %v487_v0  ;;  %p459_p8 = pnand %p458_p7, %p452_p4 }
  0x53   :  { %352 = vmatpush3.bf16.msra.mxu1 %v351_v19  ;;  %v175_v27 = vrot.slane %v174_v25, 2  ;;  %v182_v28 = vrot.slane %v181_v26, 2 }
  0x55   :  { %343 = vmatpush3.bf16.msra.mxu0 %v342_v22  ;;  %v176_v30 = vadd.f32 %v175_v27, %v174_v25  ;;  %v183_v31 = vadd.f32 %v182_v28, %v181_v26 }
  0x56   :  { %344 = vmatprep.subr.bf16.mxu0 %v487_v0 }
  0x57   :  { %v177_v32 = vrot.slane %v176_v30, 1  ;;  %v184_v33 = vrot.slane %v183_v31, 1 }
  0x59   :  { %346 = vmatpush3.bf16.msra.mxu0 %v345_v29  ;;  %v178_v35 = vadd.f32 %v177_v32, %v176_v30  ;;  %v185_v36 = vadd.f32 %v184_v33, %v183_v31 }
  0x5b   :  { %v186_v37 = vmul.f32 0.125, %v178_v35  ;;  %v187_v38 = vmul.f32 0.125, %v185_v36 }
  0x5c   :  { %322 = vmatmul.mubr.msk.f32.vlgmr.msra.gmra.mrb[0].mxu0 %vm94_vm2, %v78_v34 }
  0x5d   :  { %v196_v39 = vsel %vm195_vm3, %v187_v38, %v186_v37 }
  0x5e   :  { %333 = vmatmul.mubr.msk.f32.vlgmr.msra.gmra.mrb[0].mxu1 %vm171_vm1, %v196_v39 }
 0x12f   :  { %v164_v41 = vpop.f32.mrb[0].mxu0 }
 0x130   :  { %v165_v42 = vadd.f32 %v288_v40, %v164_v41  ;;  %v323_v43 = vpop.f32.mrb[1].mxu0 }
 0x131   :  { %v265_v44 = vpop.f32.mrb[0].mxu1 }
 0x132   :  { %168 = vst [vmem:[#allocation10] sm:$0x3] %v165_v42  ;;  %v334_v45 = vpop.f32.mrb[1].mxu1 }
 0x139   :  { %v188_v46 = vld [vmem:[#allocation10] sm:$0x3] }
 0x13a   :  { %v269_v47 = vadd.f32 %v265_v44, %v188_v46 }
 0x13c   :  { %270 = vst [vmem:[#allocation10] sm:$0x3] %v269_v47 }
 0x13d   :  { %462 = shalt.err (!%p459_p8)
}
 0x13e   :  { %s463_s19 = scalar_lea.hbm %s601_s5, 32 }
 0x13f   :  { %p464_p9 = scmp.ne.s32.totalorder %s601_s5, %s463_s19  ;;  %p467_p10 = scmp.lt.u32.totalorder %s463_s19, %s601_s5 }
 0x141   :  { %p469_p11 = pnand %p467_p10, %p464_p9 }
 0x143   :  { %472 = shalt.err (!%p469_p11)
}
 0x144   :  { %280 = dma.vmem_to_hbm [thread:$0]  %s278_s17, 32, %s601_s5, [#allocation4]  }
 0x145   :  { %479 = dma.done.wait [#allocation4], 32  }
 0x146   :  { %480 = vsyncadd [#allocation4], 4294967264 }
 0x147   :  { %284 = vsyncpa [#allocation3], 1 }
 0x148   :  { %285 = vsyncpa [#allocation6], 1 }
 0x149   :  { %286 = vsyncpa [#allocation9], 1 }
 0x14a   :  { %287 = vsyncpa [#allocation4], 1 }

</bundles_post_ra>
